<compile_context>
chip_gen: v5e
topology: v5e:2x2
jax: 0.10.0
libtpu: 0.0.40
codegen_flags: <defaults>
</compile_context>

<pallas_src>
import functools

import jax
import jax.numpy as jnp
from jax.experimental import pallas as pl
from jax.experimental.pallas import tpu as pltpu

LANE = 128


def _round_up(x, m):
    return (x + m - 1) // m * m


# --------------------------------------------------------------------------
# Kernel
# --------------------------------------------------------------------------
def _tcn_fused_kernel(x_ref, *refs, layers, k, pad_align):
    """Whole-TCN forward for one batch element (all TemporalBlocks fused).

    x_ref    : (1, L, Cp)  channel-padded input tile (compute dtype)
    refs     : per-layer packed params, then o_ref, then the staging scratch:
                 w1 (k*Cp, Cp), b1 (1, Cp), w2 (k*Cp, Cp), b2 (1, Cp),
                 [wd (Cp, Cp), bd (1, Cp)]      -- only when Cin != Cout
               o_ref : (1, L, Cp)
               stage : (pad_align + L, Cp) f32 VMEM scratch (causal staging)
    layers   : static tuple of (dilation, has_downsample) per TemporalBlock
    k        : kernel_size
    pad_align: sublane-aligned number of causal zero rows in `stage`
    """
    *params, o_ref, stage = refs

    a = x_ref[0]                             # (L, Cp) compute dtype
    L, Cp = a.shape
    cdt = a.dtype

    # Zero ONLY the causal-padding rows, once per grid step; they are never
    # overwritten (activation stores begin at row pad_align).
    stage[:pad_align, :] = jnp.zeros((pad_align, Cp), jnp.float32)

    def causal_conv(v, w_ref, b_ref, d):
        # Causal dilated conv collapsed into a single lane-dense MXU matmul.
        # v is (L, Cp) in the compute dtype.
        pad = (k - 1) * d
        stage[pad_align:, :] = v.astype(jnp.float32)        # aligned sublane store
        # tap j <-> weight rows [j*Cp, (j+1)*Cp);  tap k-1 has zero shift, so it
        # is just `v` itself (no redundant re-read from the staging buffer).
        taps = [
            stage[pad_align - pad + j * d: pad_align - pad + j * d + L, :].astype(cdt)
            for j in range(k - 1)
        ]
        taps.append(v)
        xc = jnp.concatenate(taps, axis=-1)                  # (L, k*Cp), compute dtype
        y = jnp.dot(xc, w_ref[...], preferred_element_type=jnp.float32)
        return y + b_ref[...].astype(jnp.float32)            # (L, Cp) f32

    i = 0
    for (d, has_down) in layers:                             # static unroll over layers
        w1, b1, w2, b2 = params[i], params[i + 1], params[i + 2], params[i + 3]
        i += 4
        h1 = jnp.maximum(causal_conv(a, w1, b1, d), 0.0).astype(cdt)   # conv1+chomp+ReLU
        h2 = jnp.maximum(causal_conv(h1, w2, b2, d), 0.0)              # conv2+chomp+ReLU
        if has_down:
            wd, bd = params[i], params[i + 1]
            i += 2
            res = (jnp.dot(a, wd[...], preferred_element_type=jnp.float32)
                   + bd[...].astype(jnp.float32))
        else:
            res = a.astype(jnp.float32)                      # identity residual: no matmul
        a = jnp.maximum(h2 + res, 0.0).astype(cdt)           # final block ReLU

    o_ref[0] = a.astype(o_ref.dtype)


# --------------------------------------------------------------------------
# Parameter packing (lane-dense, channel-padded) and synthetic init
# --------------------------------------------------------------------------
def _pack_conv_weight(w_kio, cp, dtype):
    # (k, cin, cout) tap-major -> (k*cp, cp), tap j occupies rows [j*cp, (j+1)*cp)
    k, cin, cout = w_kio.shape
    w = jnp.zeros((k, cp, cp), dtype)
    w = w.at[:, :cin, :cout].set(w_kio.astype(dtype))
    return w.reshape(k * cp, cp)


def _pack_dense(w_io, cp, dtype):
    cin, cout = w_io.shape
    return jnp.zeros((cp, cp), dtype).at[:cin, :cout].set(w_io.astype(dtype))


def _pack_bias(b, cp, dtype):
    return jnp.zeros((1, cp), dtype).at[0, :b.shape[0]].set(b.astype(dtype))


def init_tcn_params(key, num_inputs, num_channels, kernel_size):
    """Synthetic params following init_weights(): conv weight ~ N(0, sqrt(2/(k*Cout))),
    biases zero; downsample only when Cin != Cout (else identity residual)."""
    params = []
    for i, cout in enumerate(num_channels):
        cin = num_inputs if i == 0 else num_channels[i - 1]
        key, k1, k2, k3 = jax.random.split(key, 4)
        std = (2.0 / float(kernel_size * cout)) ** 0.5
        w1 = std * jax.random.normal(k1, (kernel_size, cin, cout), jnp.float32)
        w2 = std * jax.random.normal(k2, (kernel_size, cout, cout), jnp.float32)
        b1 = jnp.zeros((cout,), jnp.float32)
        b2 = jnp.zeros((cout,), jnp.float32)
        if cin != cout:
            std_d = (2.0 / float(cout)) ** 0.5
            wd = std_d * jax.random.normal(k3, (cin, cout), jnp.float32)
            bd = jnp.zeros((cout,), jnp.float32)
        else:
            wd, bd = None, None                 # downsample is None in PyTorch
        params.append(dict(w1=w1, b1=b1, w2=w2, b2=b2, wd=wd, bd=bd))
    return params


# --------------------------------------------------------------------------
# Wrapper
# --------------------------------------------------------------------------
def temporal_conv_net(x_ncw, params, kernel_size=2, compute_dtype=jnp.bfloat16):
    """x_ncw: (B, num_inputs, L) PyTorch NCW layout. Returns (B, C_last, L)."""
    B, c_in, L = x_ncw.shape
    c_last = params[-1]["w1"].shape[-1]
    cp = _round_up(max([c_in] + [p["w1"].shape[-1] for p in params]), LANE)

    num_layers = len(params)
    max_pad = (kernel_size - 1) * (2 ** (num_layers - 1))
    pad_align = max(8, _round_up(max_pad, 8))    # f32 stage -> 8-sublane alignment

    # NCW -> (B, L, C); pad channels ONCE to a lane-dense multiple of 128.
    x_blc = jnp.transpose(x_ncw, (0, 2, 1)).astype(compute_dtype)
    x_blc = jnp.pad(x_blc, ((0, 0), (0, 0), (0, cp - c_in)))

    flat, layers = [], []
    flops = 0
    for i, p in enumerate(params):
        d = 2 ** i
        has_down = p["wd"] is not None
        layers.append((d, has_down))
        flat += [_pack_conv_weight(p["w1"], cp, compute_dtype),
                 _pack_bias(p["b1"], cp, compute_dtype),
                 _pack_conv_weight(p["w2"], cp, compute_dtype),
                 _pack_bias(p["b2"], cp, compute_dtype)]
        flops += 2 * (2 * L * (kernel_size * cp) * cp)       # two dilated convs
        if has_down:
            flat += [_pack_dense(p["wd"], cp, compute_dtype),
                     _pack_bias(p["bd"], cp, compute_dtype)]
            flops += 2 * L * cp * cp                         # 1x1 downsample
    flops *= B

    kernel = functools.partial(_tcn_fused_kernel, layers=tuple(layers),
                               k=kernel_size, pad_align=pad_align)

    def _const_map(nd):
        return lambda b: (0,) * nd

    in_specs = ([pl.BlockSpec((1, L, cp), lambda b: (b, 0, 0))]
                + [pl.BlockSpec(a.shape, _const_map(a.ndim)) for a in flat])
    out_specs = pl.BlockSpec((1, L, cp), lambda b: (b, 0, 0))

    # VMEM budget (double-buffered act tiles + weights + staging + headroom);
    # keep well under v7x's 64 MiB physical VMEM.
    itemsize = jnp.dtype(compute_dtype).itemsize
    act_bytes = L * cp * itemsize
    w_bytes = sum(int(a.size) * a.dtype.itemsize for a in flat)
    stage_bytes = (pad_align + L) * cp * 4
    est = 4 * act_bytes + 2 * w_bytes + stage_bytes + 8 * L * cp * 4
    vmem_limit = int(min(48 * 2 ** 20, max(32 * 2 ** 20, 2 * est)))

    bytes_accessed = 2 * B * act_bytes + w_bytes             # in + out + weights (once)
    cost = pl.CostEstimate(flops=flops, transcendentals=0,
                           bytes_accessed=bytes_accessed)

    out = pl.pallas_call(
        kernel,
        out_shape=jax.ShapeDtypeStruct((B, L, cp), compute_dtype),
        grid=(B,),
        in_specs=in_specs,
        out_specs=out_specs,
        scratch_shapes=[pltpu.VMEM((pad_align + L, cp), jnp.float32)],
        compiler_params=pltpu.CompilerParams(
            dimension_semantics=("parallel",),
            vmem_limit_bytes=vmem_limit),
        cost_estimate=cost,
    )(x_blc, *flat)

    out = out[:, :, :c_last].astype(x_ncw.dtype)   # drop lane padding
    return jnp.transpose(out, (0, 2, 1))           # back to NCW


# --------------------------------------------------------------------------
# Pure-JAX reference (same math, no Pallas) for self-validation
# --------------------------------------------------------------------------
def tcn_reference(x_ncw, params, kernel_size=2):
    h = jnp.transpose(x_ncw, (0, 2, 1))            # (B, L, C)
    L = h.shape[1]
    for i, p in enumerate(params):
        d = 2 ** i
        pad = (kernel_size - 1) * d

        def conv(v, w, b):
            vp = jnp.pad(v, ((0, 0), (pad, 0), (0, 0)))
            out = b[None, None, :]
            for j in range(kernel_size):
                out = out + jnp.einsum('blc,co->blo', vp[:, j * d:j * d + L, :], w[j])
            return out

        h1 = jax.nn.relu(conv(h, p["w1"], p["b1"]))
        h2 = jax.nn.relu(conv(h1, p["w2"], p["b2"]))
        if p["wd"] is not None:
            res = jnp.einsum('blc,co->blo', h, p["wd"]) + p["bd"][None, None, :]
        else:
            res = h
        h = jax.nn.relu(h2 + res)
    return jnp.transpose(h, (0, 2, 1))


if __name__ == "__main__":
    # Small shapes consistent with the module: batch=2, num_inputs=4, L=16,
    # num_channels=[8, 8], kernel_size=2 (dilations 1, 2).
    B, C_IN, L = 2, 4, 16
    NUM_CHANNELS = [8, 8]
    KERNEL_SIZE = 2

    key = jax.random.PRNGKey(0)
    key, xkey = jax.random.split(key)
    x = jax.random.normal(xkey, (B, C_IN, L), jnp.float32)   # NCW like PyTorch

    params = init_tcn_params(key, C_IN, NUM_CHANNELS, KERNEL_SIZE)

    ref = jax.block_until_ready(tcn_reference(x, params, kernel_size=KERNEL_SIZE))

    # Exact-math check: f32 compute path vs pure-JAX reference.
    out_f32 = jax.block_until_ready(
        temporal_conv_net(x, params, kernel_size=KERNEL_SIZE,
                          compute_dtype=jnp.float32))
    assert out_f32.shape == (B, NUM_CHANNELS[-1], L), out_f32.shape
    assert jnp.allclose(out_f32, ref, rtol=1e-5, atol=1e-5), \
        float(jnp.max(jnp.abs(out_f32 - ref)))

    # Performance path: bf16 activations/weights with f32 MXU accumulation.
    out = jax.block_until_ready(
        temporal_conv_net(x, params, kernel_size=KERNEL_SIZE,
                          compute_dtype=jnp.bfloat16))
    assert out.shape == (B, NUM_CHANNELS[-1], L), out.shape
    assert jnp.all(jnp.isfinite(out))
    assert jnp.all(out >= 0.0)                      # final ReLU
    assert jnp.allclose(out, ref, rtol=5e-2, atol=5e-2)
    print("KERNEL_OK")
</pallas_src>

<mosaic_0001>
module attributes {stable_mosaic.version = 11 : i64} {
  func.func @_tcn_fused_kernel(%arg0: i32, %arg1: memref<1x16x128xf32, #tpu.memory_space<vmem>>, %arg2: memref<256x128xf32, #tpu.memory_space<vmem>>, %arg3: memref<1x128xf32, #tpu.memory_space<vmem>>, %arg4: memref<256x128xf32, #tpu.memory_space<vmem>>, %arg5: memref<1x128xf32, #tpu.memory_space<vmem>>, %arg6: memref<128x128xf32, #tpu.memory_space<vmem>>, %arg7: memref<1x128xf32, #tpu.memory_space<vmem>>, %arg8: memref<256x128xf32, #tpu.memory_space<vmem>>, %arg9: memref<1x128xf32, #tpu.memory_space<vmem>>, %arg10: memref<256x128xf32, #tpu.memory_space<vmem>>, %arg11: memref<1x128xf32, #tpu.memory_space<vmem>>, %arg12: memref<1x16x128xf32, #tpu.memory_space<vmem>>, %arg13: memref<24x128xf32, #tpu.memory_space<vmem>>) attributes {dimension_semantics = [#tpu.dimension_semantics<parallel>], iteration_bounds = array<i64: 2>, scalar_prefetch = 0 : i64, scratch_operands = 1 : i64, tpu.core_type = #tpu.core_type<tc>, window_params = [{transform_indices = @transform_0, window_bounds = array<i64: 1, 16, 128>}, {pipeline_mode = #tpu.pipeline_mode<synchronous>, transform_indices = @transform_1, window_bounds = array<i64: 256, 128>}, {pipeline_mode = #tpu.pipeline_mode<synchronous>, transform_indices = @transform_2, window_bounds = array<i64: 1, 128>}, {pipeline_mode = #tpu.pipeline_mode<synchronous>, transform_indices = @transform_3, window_bounds = array<i64: 256, 128>}, {pipeline_mode = #tpu.pipeline_mode<synchronous>, transform_indices = @transform_4, window_bounds = array<i64: 1, 128>}, {pipeline_mode = #tpu.pipeline_mode<synchronous>, transform_indices = @transform_5, window_bounds = array<i64: 128, 128>}, {pipeline_mode = #tpu.pipeline_mode<synchronous>, transform_indices = @transform_6, window_bounds = array<i64: 1, 128>}, {pipeline_mode = #tpu.pipeline_mode<synchronous>, transform_indices = @transform_7, window_bounds = array<i64: 256, 128>}, {pipeline_mode = #tpu.pipeline_mode<synchronous>, transform_indices = @transform_8, window_bounds = array<i64: 1, 128>}, {pipeline_mode = #tpu.pipeline_mode<synchronous>, transform_indices = @transform_9, window_bounds = array<i64: 256, 128>}, {pipeline_mode = #tpu.pipeline_mode<synchronous>, transform_indices = @transform_10, window_bounds = array<i64: 1, 128>}, {transform_indices = @transform_11, window_bounds = array<i64: 1, 16, 128>}]} {
    %c0 = arith.constant 0 : index
    %c0_0 = arith.constant 0 : index
    %c0_1 = arith.constant 0 : index
    %0 = vector.load %arg1[%c0, %c0_0, %c0_1] : memref<1x16x128xf32, #tpu.memory_space<vmem>>, vector<1x16x128xf32>
    %1 = vector.shape_cast %0 : vector<1x16x128xf32> to vector<16x128xf32>
    %cst = arith.constant 0.000000e+00 : f32
    %2 = vector.broadcast %cst : f32 to vector<8x128xf32>
    %c0_2 = arith.constant 0 : index
    %c0_3 = arith.constant 0 : index
    %3 = vector.load %arg13[%c0_2, %c0_3] : memref<24x128xf32, #tpu.memory_space<vmem>>, vector<8x128xf32>
    tpu.vector_store %arg13[%c0_2, %c0_3], %2 {strides = array<i32>} : memref<24x128xf32, #tpu.memory_space<vmem>>, vector<8x128xf32>,
    %c8 = arith.constant 8 : index
    %c0_4 = arith.constant 0 : index
    %4 = vector.load %arg13[%c8, %c0_4] : memref<24x128xf32, #tpu.memory_space<vmem>>, vector<16x128xf32>
    tpu.vector_store %arg13[%c8, %c0_4], %1 {strides = array<i32>} : memref<24x128xf32, #tpu.memory_space<vmem>>, vector<16x128xf32>,
    %c7 = arith.constant 7 : index
    %c0_5 = arith.constant 0 : index
    %5 = vector.load %arg13[%c7, %c0_5] : memref<24x128xf32, #tpu.memory_space<vmem>>, vector<16x128xf32>
    %6 = tpu.concatenate %5, %1 in 1 : vector<16x128xf32>, vector<16x128xf32> -> vector<16x256xf32>
    %c0_6 = arith.constant 0 : index
    %c0_7 = arith.constant 0 : index
    %7 = vector.load %arg2[%c0_6, %c0_7] : memref<256x128xf32, #tpu.memory_space<vmem>>, vector<256x128xf32>
    %cst_8 = arith.constant dense<0.000000e+00> : vector<16x128xf32>
    %8 = tpu.matmul %6, %7, %cst_8 {dimension_numbers = #tpu.dot_dimension_numbers<[1], [0], [0], [1], [0, 0, 1, 1], [], []>} : vector<16x256xf32>, vector<256x128xf32>, vector<16x128xf32> -> vector<16x128xf32>
    %c0_9 = arith.constant 0 : index
    %c0_10 = arith.constant 0 : index
    %9 = vector.load %arg3[%c0_9, %c0_10] : memref<1x128xf32, #tpu.memory_space<vmem>>, vector<1x128xf32>
    %10 = vector.broadcast %9 : vector<1x128xf32> to vector<16x128xf32>
    %11 = arith.addf %8, %10 : vector<16x128xf32>
    %cst_11 = arith.constant 0.000000e+00 : f32
    %12 = vector.broadcast %cst_11 : f32 to vector<16x128xf32>
    %13 = arith.maximumf %11, %12 : vector<16x128xf32>
    %c8_12 = arith.constant 8 : index
    %c0_13 = arith.constant 0 : index
    %14 = vector.load %arg13[%c8_12, %c0_13] : memref<24x128xf32, #tpu.memory_space<vmem>>, vector<16x128xf32>
    tpu.vector_store %arg13[%c8_12, %c0_13], %13 {strides = array<i32>} : memref<24x128xf32, #tpu.memory_space<vmem>>, vector<16x128xf32>,
    %c7_14 = arith.constant 7 : index
    %c0_15 = arith.constant 0 : index
    %15 = vector.load %arg13[%c7_14, %c0_15] : memref<24x128xf32, #tpu.memory_space<vmem>>, vector<16x128xf32>
    %16 = tpu.concatenate %15, %13 in 1 : vector<16x128xf32>, vector<16x128xf32> -> vector<16x256xf32>
    %c0_16 = arith.constant 0 : index
    %c0_17 = arith.constant 0 : index
    %17 = vector.load %arg4[%c0_16, %c0_17] : memref<256x128xf32, #tpu.memory_space<vmem>>, vector<256x128xf32>
    %cst_18 = arith.constant dense<0.000000e+00> : vector<16x128xf32>
    %18 = tpu.matmul %16, %17, %cst_18 {dimension_numbers = #tpu.dot_dimension_numbers<[1], [0], [0], [1], [0, 0, 1, 1], [], []>} : vector<16x256xf32>, vector<256x128xf32>, vector<16x128xf32> -> vector<16x128xf32>
    %c0_19 = arith.constant 0 : index
    %c0_20 = arith.constant 0 : index
    %19 = vector.load %arg5[%c0_19, %c0_20] : memref<1x128xf32, #tpu.memory_space<vmem>>, vector<1x128xf32>
    %20 = vector.broadcast %19 : vector<1x128xf32> to vector<16x128xf32>
    %21 = arith.addf %18, %20 : vector<16x128xf32>
    %cst_21 = arith.constant 0.000000e+00 : f32
    %22 = vector.broadcast %cst_21 : f32 to vector<16x128xf32>
    %23 = arith.maximumf %21, %22 : vector<16x128xf32>
    %c0_22 = arith.constant 0 : index
    %c0_23 = arith.constant 0 : index
    %24 = vector.load %arg6[%c0_22, %c0_23] : memref<128x128xf32, #tpu.memory_space<vmem>>, vector<128x128xf32>
    %cst_24 = arith.constant dense<0.000000e+00> : vector<16x128xf32>
    %25 = tpu.matmul %1, %24, %cst_24 {dimension_numbers = #tpu.dot_dimension_numbers<[1], [0], [0], [1], [0, 0, 1, 1], [], []>} : vector<16x128xf32>, vector<128x128xf32>, vector<16x128xf32> -> vector<16x128xf32>
    %c0_25 = arith.constant 0 : index
    %c0_26 = arith.constant 0 : index
    %26 = vector.load %arg7[%c0_25, %c0_26] : memref<1x128xf32, #tpu.memory_space<vmem>>, vector<1x128xf32>
    %27 = vector.broadcast %26 : vector<1x128xf32> to vector<16x128xf32>
    %28 = arith.addf %25, %27 : vector<16x128xf32>
    %29 = arith.addf %23, %28 : vector<16x128xf32>
    %cst_27 = arith.constant 0.000000e+00 : f32
    %30 = vector.broadcast %cst_27 : f32 to vector<16x128xf32>
    %31 = arith.maximumf %29, %30 : vector<16x128xf32>
    %c8_28 = arith.constant 8 : index
    %c0_29 = arith.constant 0 : index
    %32 = vector.load %arg13[%c8_28, %c0_29] : memref<24x128xf32, #tpu.memory_space<vmem>>, vector<16x128xf32>
    tpu.vector_store %arg13[%c8_28, %c0_29], %31 {strides = array<i32>} : memref<24x128xf32, #tpu.memory_space<vmem>>, vector<16x128xf32>,
    %c6 = arith.constant 6 : index
    %c0_30 = arith.constant 0 : index
    %33 = vector.load %arg13[%c6, %c0_30] : memref<24x128xf32, #tpu.memory_space<vmem>>, vector<16x128xf32>
    %34 = tpu.concatenate %33, %31 in 1 : vector<16x128xf32>, vector<16x128xf32> -> vector<16x256xf32>
    %c0_31 = arith.constant 0 : index
    %c0_32 = arith.constant 0 : index
    %35 = vector.load %arg8[%c0_31, %c0_32] : memref<256x128xf32, #tpu.memory_space<vmem>>, vector<256x128xf32>
    %cst_33 = arith.constant dense<0.000000e+00> : vector<16x128xf32>
    %36 = tpu.matmul %34, %35, %cst_33 {dimension_numbers = #tpu.dot_dimension_numbers<[1], [0], [0], [1], [0, 0, 1, 1], [], []>} : vector<16x256xf32>, vector<256x128xf32>, vector<16x128xf32> -> vector<16x128xf32>
    %c0_34 = arith.constant 0 : index
    %c0_35 = arith.constant 0 : index
    %37 = vector.load %arg9[%c0_34, %c0_35] : memref<1x128xf32, #tpu.memory_space<vmem>>, vector<1x128xf32>
    %38 = vector.broadcast %37 : vector<1x128xf32> to vector<16x128xf32>
    %39 = arith.addf %36, %38 : vector<16x128xf32>
    %cst_36 = arith.constant 0.000000e+00 : f32
    %40 = vector.broadcast %cst_36 : f32 to vector<16x128xf32>
    %41 = arith.maximumf %39, %40 : vector<16x128xf32>
    %c8_37 = arith.constant 8 : index
    %c0_38 = arith.constant 0 : index
    %42 = vector.load %arg13[%c8_37, %c0_38] : memref<24x128xf32, #tpu.memory_space<vmem>>, vector<16x128xf32>
    tpu.vector_store %arg13[%c8_37, %c0_38], %41 {strides = array<i32>} : memref<24x128xf32, #tpu.memory_space<vmem>>, vector<16x128xf32>,
    %c6_39 = arith.constant 6 : index
    %c0_40 = arith.constant 0 : index
    %43 = vector.load %arg13[%c6_39, %c0_40] : memref<24x128xf32, #tpu.memory_space<vmem>>, vector<16x128xf32>
    %44 = tpu.concatenate %43, %41 in 1 : vector<16x128xf32>, vector<16x128xf32> -> vector<16x256xf32>
    %c0_41 = arith.constant 0 : index
    %c0_42 = arith.constant 0 : index
    %45 = vector.load %arg10[%c0_41, %c0_42] : memref<256x128xf32, #tpu.memory_space<vmem>>, vector<256x128xf32>
    %cst_43 = arith.constant dense<0.000000e+00> : vector<16x128xf32>
    %46 = tpu.matmul %44, %45, %cst_43 {dimension_numbers = #tpu.dot_dimension_numbers<[1], [0], [0], [1], [0, 0, 1, 1], [], []>} : vector<16x256xf32>, vector<256x128xf32>, vector<16x128xf32> -> vector<16x128xf32>
    %c0_44 = arith.constant 0 : index
    %c0_45 = arith.constant 0 : index
    %47 = vector.load %arg11[%c0_44, %c0_45] : memref<1x128xf32, #tpu.memory_space<vmem>>, vector<1x128xf32>
    %48 = vector.broadcast %47 : vector<1x128xf32> to vector<16x128xf32>
    %49 = arith.addf %46, %48 : vector<16x128xf32>
    %cst_46 = arith.constant 0.000000e+00 : f32
    %50 = vector.broadcast %cst_46 : f32 to vector<16x128xf32>
    %51 = arith.maximumf %49, %50 : vector<16x128xf32>
    %52 = arith.addf %51, %31 : vector<16x128xf32>
    %cst_47 = arith.constant 0.000000e+00 : f32
    %53 = vector.broadcast %cst_47 : f32 to vector<16x128xf32>
    %54 = arith.maximumf %52, %53 : vector<16x128xf32>
    %c0_48 = arith.constant 0 : index
    %c0_49 = arith.constant 0 : index
    %c0_50 = arith.constant 0 : index
    %55 = vector.load %arg12[%c0_48, %c0_49, %c0_50] : memref<1x16x128xf32, #tpu.memory_space<vmem>>, vector<1x16x128xf32>
    %56 = vector.shape_cast %55 : vector<1x16x128xf32> to vector<16x128xf32>
    %57 = vector.shape_cast %54 : vector<16x128xf32> to vector<1x16x128xf32>
    tpu.vector_store %arg12[%c0_48, %c0_49, %c0_50], %57 {strides = array<i32>} : memref<1x16x128xf32, #tpu.memory_space<vmem>>, vector<1x16x128xf32>,
    return
  }
  func.func @transform_0(%arg0: i32) -> (i32, i32, i32) {
    %c0_i32 = arith.constant 0 : i32
    %c0_i32_0 = arith.constant 0 : i32
    %c0_i32_1 = arith.constant 0 : i32
    return %arg0, %c0_i32, %c0_i32_0 : i32, i32, i32
  }
  func.func @transform_1(%arg0: i32) -> (i32, i32) {
    %c0_i32 = arith.constant 0 : i32
    %c0_i32_0 = arith.constant 0 : i32
    %c0_i32_1 = arith.constant 0 : i32
    return %c0_i32, %c0_i32_0 : i32, i32
  }
  func.func @transform_2(%arg0: i32) -> (i32, i32) {
    %c0_i32 = arith.constant 0 : i32
    %c0_i32_0 = arith.constant 0 : i32
    %c0_i32_1 = arith.constant 0 : i32
    return %c0_i32, %c0_i32_0 : i32, i32
  }
  func.func @transform_3(%arg0: i32) -> (i32, i32) {
    %c0_i32 = arith.constant 0 : i32
    %c0_i32_0 = arith.constant 0 : i32
    %c0_i32_1 = arith.constant 0 : i32
    return %c0_i32, %c0_i32_0 : i32, i32
  }
  func.func @transform_4(%arg0: i32) -> (i32, i32) {
    %c0_i32 = arith.constant 0 : i32
    %c0_i32_0 = arith.constant 0 : i32
    %c0_i32_1 = arith.constant 0 : i32
    return %c0_i32, %c0_i32_0 : i32, i32
  }
  func.func @transform_5(%arg0: i32) -> (i32, i32) {
    %c0_i32 = arith.constant 0 : i32
    %c0_i32_0 = arith.constant 0 : i32
    %c0_i32_1 = arith.constant 0 : i32
    return %c0_i32, %c0_i32_0 : i32, i32
  }
  func.func @transform_6(%arg0: i32) -> (i32, i32) {
    %c0_i32 = arith.constant 0 : i32
    %c0_i32_0 = arith.constant 0 : i32
    %c0_i32_1 = arith.constant 0 : i32
    return %c0_i32, %c0_i32_0 : i32, i32
  }
  func.func @transform_7(%arg0: i32) -> (i32, i32) {
    %c0_i32 = arith.constant 0 : i32
    %c0_i32_0 = arith.constant 0 : i32
    %c0_i32_1 = arith.constant 0 : i32
    return %c0_i32, %c0_i32_0 : i32, i32
  }
  func.func @transform_8(%arg0: i32) -> (i32, i32) {
    %c0_i32 = arith.constant 0 : i32
    %c0_i32_0 = arith.constant 0 : i32
    %c0_i32_1 = arith.constant 0 : i32
    return %c0_i32, %c0_i32_0 : i32, i32
  }
  func.func @transform_9(%arg0: i32) -> (i32, i32) {
    %c0_i32 = arith.constant 0 : i32
    %c0_i32_0 = arith.constant 0 : i32
    %c0_i32_1 = arith.constant 0 : i32
    return %c0_i32, %c0_i32_0 : i32, i32
  }
  func.func @transform_10(%arg0: i32) -> (i32, i32) {
    %c0_i32 = arith.constant 0 : i32
    %c0_i32_0 = arith.constant 0 : i32
    %c0_i32_1 = arith.constant 0 : i32
    return %c0_i32, %c0_i32_0 : i32, i32
  }
  func.func @transform_11(%arg0: i32) -> (i32, i32, i32) {
    %c0_i32 = arith.constant 0 : i32
    %c0_i32_0 = arith.constant 0 : i32
    %c0_i32_1 = arith.constant 0 : i32
    return %arg0, %c0_i32, %c0_i32_0 : i32, i32, i32
  }
}

</mosaic_0001>

<bundles_post_ra>
// kernel: tpu_custom_call.1
= control target key start
LH: loop header
LB: loop body
LE: loop exit
PB: predicated region body
PF: predicated region fallthrough
CT: control target
= control target key end

     0   :  { %s1745_s0 = inlined_call_operand.hbm [shape: f32[2,16,128], index: 0, kind: input, shape index: {}]   ;;  %s1746_s1 = inlined_call_operand.hbm [shape: f32[256,128], index: 1, kind: input, shape index: {}]   ;;  %s1747_s2 = inlined_call_operand.vmem [shape: f32[1,128], index: 2, kind: input, shape index: {}]   ;;  %s1748_s3 = inlined_call_operand.hbm [shape: f32[256,128], index: 3, kind: input, shape index: {}]   ;;  %s1749_s4 = inlined_call_operand.vmem [shape: f32[1,128], index: 4, kind: input, shape index: {}]   ;;  %s1750_s5 = inlined_call_operand.hbm [shape: f32[128,128], index: 5, kind: input, shape index: {}]   ;;  %s1751_s6 = inlined_call_operand.vmem [shape: f32[1,128], index: 6, kind: input, shape index: {}]   ;;  %s1752_s7 = inlined_call_operand.hbm [shape: f32[256,128], index: 7, kind: input, shape index: {}]   ;;  %s1753_s8 = inlined_call_operand.vmem [shape: f32[1,128], index: 8, kind: input, shape index: {}]   ;;  %s1754_s9 = inlined_call_operand.hbm [shape: f32[256,128], index: 9, kind: input, shape index: {}]   ;;  %s1755_s10 = inlined_call_operand.vmem [shape: f32[1,128], index: 10, kind: input, shape index: {}]   ;;  %s1756_s11 = inlined_call_operand.hbm [shape: f32[2,16,128], index: 11, kind: output, shape index: {}]  }
   0x1   :  { %1759 = sst [smem:[#allocation20_spill]] %s1746_s1 }
   0x2   :  { %1760 = sst [smem:[#allocation21_spill]] %s1748_s3 }
   0x3   :  { %1761 = sst [smem:[#allocation22_spill]] %s1750_s5 }
   0x4   :  { %1762 = sst [smem:[#allocation23_spill]] %s1752_s7 }
   0x5   :  { %1763 = sst [smem:[#allocation24_spill]] %s1754_s9 }
   0x6   :  { %16 = vsyncpa [#allocation4], 0 }
   0x7   :  { %18 = vsyncpa [#allocation4 + $0x1], 0 }
   0x8   :  { %19 = vsyncpa [#allocation7], 0 }
   0x9   :  { %20 = vsyncpa [#allocation10], 0 }
   0xa   :  { %21 = vsyncpa [#allocation13], 0 }
   0xb   :  { %22 = vsyncpa [#allocation5], 0 }
   0xc   :  { %24 = vsyncpa [#allocation5 + $0x1], 0  ;;  %s1514_s17 = smov 0   ;;  %s1516_s18 = smov 0  }
   0xd   :  { %s1518_s19 = smov 0   ;;  %s1520_s20 = smov 0  }
   0xe LB: > { %s1764_s1 = sld [smem:[#allocation20_spill]]  ;;  %s1538_s24 = sadd.s32 4294967295, %s1442_s20   ;;  %s1442_s20 = sphi %s1520_s20, %s1781_s20   ;;  %s1438_s19 = sphi %s1518_s19, %s1780_s19   ;;  %s1434_s18 = sphi %s1516_s18, %s1779_s18   ;;  %s1430_s17 = sphi %s1514_s17, %s1778_s17  }
   0xf   : > { %p1036_p0 = scmp.ge.s32.totalorder %s1442_s20, 1  ;;  %p51_p1 = scmp.eq.s32.totalorder %s1538_s24, 0 }
  0x10   : > { %p297_p2 = scmp.lt.s32.totalorder %s1442_s20, 3  ;;  %s1444_s26 = smov [#allocation6]  }
  0x11   : > { %s310_s27 = sshll.u32 %s1444_s26, 4  ;;  %s1766_s5 = sld [smem:[#allocation22_spill]]  ;;  %s311_s27 = int_to_ptr.vmem [resolvable:$true] %s310_s27 }
  0x12   : > { %p1543_p3 = pnand %p1036_p0, %p297_p2  ;;  %s1768_s3 = sld [smem:[#allocation21_spill]] }
  0x13   : > { %s1445_s16 = smov [#allocation9]   ;;  %s1757_s22 = smov 128  }
  0x14   : > { %s308_s23 = sshll.u32 %s1764_s1, 4  ;;  %p1101_p4 = pneg %p1543_p3  ;;  %s309_s23 = int_to_ptr.hbm [resolvable:$true] %s308_s23 }
  0x15   : > { %s344_s21 = sshll.u32 %s1445_s16, 4  ;;  %s1758_s26 = smov 8   ;;  %s345_s21 = int_to_ptr.vmem [resolvable:$true] %s344_s21 }
  0x16   : > { %p1555_p6 = pnand %p1101_p4, %p51_p1  ;;  %s1769_s7 = sld [smem:[#allocation23_spill]] }
  0x17   : > { %s342_s30 = sshll.u32 %s1766_s5, 4  ;;  %s1448_s14 = smov [#allocation8]   ;;  %s343_s30 = int_to_ptr.hbm [resolvable:$true] %s342_s30 }
  0x18   : > { %s325_s15 = sshll.u32 %s1768_s3, 4  ;;  %s327_s16 = sshll.u32 %s1448_s14, 4  ;;  %s326_s15 = int_to_ptr.hbm [resolvable:$true] %s325_s15  ;;  %s328_s16 = int_to_ptr.vmem [resolvable:$true] %s327_s16 }
  0x19   : > { %1104 = dma.hbm_to_vmem [thread:$0]  (!%p1555_p6), %s309_s23, 4096, %s311_s27, [#allocation7], %s1757_s22, %s1757_s22, %s1758_s26  }
  0x1a   : > { %1110 = dma.hbm_to_vmem [thread:$0]  (!%p1555_p6), %s343_s30, 2048, %s345_s21, [#allocation10], %s1757_s22, %s1757_s22, %s1758_s26  }
  0x1b   : > { %1107 = dma.hbm_to_vmem [thread:$0]  (!%p1555_p6), %s326_s15, 4096, %s328_s16, [#allocation7], %s1757_s22, %s1757_s22, %s1758_s26  }
  0x1c   : > { %s359_s13 = sshll.u32 %s1769_s7, 4  ;;  %s1449_s23 = smov [#allocation11]   ;;  %s360_s13 = int_to_ptr.hbm [resolvable:$true] %s359_s13 }
  0x1d   : > { %s361_s27 = sshll.u32 %s1449_s23, 4  ;;  %s1770_s9 = sld [smem:[#allocation24_spill]]  ;;  %s362_s27 = int_to_ptr.vmem [resolvable:$true] %s361_s27 }
  0x1e   : > { %1113 = dma.hbm_to_vmem [thread:$0]  (!%p1555_p6), %s360_s13, 4096, %s362_s27, [#allocation10], %s1757_s22, %s1757_s22, %s1758_s26  }
  0x1f   : > { %s1450_s15 = smov [#allocation12]   ;;  %s1035_s14 = sadd.s32 4294967294, %s1442_s20  }
  0x20   : > { %s378_s29 = sshll.u32 %s1450_s15, 4  ;;  %s1595_s16 = sadd.s32 1, %s1442_s20   ;;  %s379_s29 = int_to_ptr.vmem [resolvable:$true] %s378_s29 }
  0x21   : > { %s37_s23 = sadd.s32 1, %s1438_s19  ;;  %s34_s30 = ssub.s32 %s1442_s20, %s1595_s16 }
  0x22   : > { %p44_p7 = scmp.ne.s32.totalorder %s1438_s19, %s1434_s18  ;;  %p35_p8 = scmp.eq.s32.totalorder %s34_s30, 0 }
  0x23   : > { %s376_s28 = sshll.u32 %s1770_s9, 4  ;;  %p45_p9 = scmp.eq.s32.totalorder %s1442_s20, 0  ;;  %s377_s28 = int_to_ptr.hbm [resolvable:$true] %s376_s28 }
  0x24   : > { %1116 = dma.hbm_to_vmem [thread:$0]  (!%p1555_p6), %s377_s28, 4096, %s379_s29, [#allocation13], %s1757_s22, %s1757_s22, %s1758_s26  }
  0x25   : > { %p50_p10 = scmp.ne.s32.totalorder %s1434_s18, %s1430_s17  ;;  %p284_p11 = scmp.eq.s32.totalorder %s1538_s24, 1 }
  0x26   : > { %s1607_s13 = scalar_select %p35_p8, %s1438_s19, %s37_s23  }
  0x27   : > { %p1611_p12 = por %p51_p1, %p50_p10  ;;  %p1615_p13 = por %p284_p11, %p44_p7 }
  0x28   : > { %p290_p0 = scmp.eq.s32.totalorder %s1035_s14, 1  ;;  %p46_p2 = por %p45_p9, %p44_p7 }
  0x29   : > { %s395_s21 = sand.u32 1, %s1438_s19   ;;  %p1130_p6 = scmp.lt.s32.totalorder %s1442_s20, 2 }
  0x2a   : > { %p1620_p4 = por %p290_p0, %p50_p10  ;;  %s1043_s15 = sshll.u32 %s395_s21, 4 }
  0x2b   : > { %s1059_s29 = sshll.u32 %s1442_s20, 4  ;;  %s399_s1 = scalar_lea.vmem [#allocation3], %s1043_s15 }
  0x2c   : > { %s404_s22 = scalar_lea.hbm %s1745_s0, %s1059_s29  ;;  %s407_s3 = sshll.u32 %s399_s1, 4  ;;  %s408_s3 = int_to_ptr.vmem [resolvable:$true] %s407_s3 }
  0x2d   : > { %s405_s26 = sshll.u32 %s404_s22, 4  ;;  %p1629_p8 = pnand %p1130_p6, %p46_p2  ;;  %s406_s26 = int_to_ptr.hbm [resolvable:$true] %s405_s26 }
  0x2e   : > { %s396_s5 = scalar_lea.sflag [#allocation4], %s395_s21  ;;  %s1334_s7 = sshra.s32 %s406_s26, 4  ;;  %s1335_s7 = int_to_ptr.hbm [resolvable:$true] %s1334_s7 }
  0x2f   : > { %s1336_s9 = scalar_lea.hbm %s1335_s7, 16  ;;  %p1338_p9 = pneg %p1629_p8 }
  0x30   : > { %p1337_p7 = scmp.ne.s32.totalorder %s1335_s7, %s1336_s9  ;;  %s1341_s1 = scalar_lea.hbm %s1745_s0, 32 }
  0x31   : > { %p1342_p0 = scmp.lt.s32.totalorder %s1335_s7, %s1745_s0  ;;  %p1343_p2 = scmp.lt.s32.totalorder %s1341_s1, %s1336_s9 }
  0x32   : > { %p1339_p10 = pnand %p1338_p9, %p1337_p7 }
  0x33   : > { %p1344_p6 = por %p1343_p2, %p1342_p0 }
  0x34   : > { %p1340_p11 = pneg %p1339_p10 }
  0x36   : > { %p1345_p5 = pnand %p1344_p6, %p1340_p11 }
  0x38   : > { %1348 = shalt.err (!%p1345_p5)
}
  0x39   : > { %s1775_s21 = smov 8   ;;  %s1776_s30 = smov 128  }
  0x3a   : > { %1120 = dma.hbm_to_vmem [thread:$0]  (!%p1629_p8), %s406_s26, 256, %s408_s3, %s396_s5, %s1776_s30, %s1776_s30, %s1775_s21  }
  0x3b   : > { %419 = sbr.rel (%p1543_p3) target bundleno = 687 (0x2af), region = 64  ;;  %s1649_s29 = sand.u32 (!%p1543_p3), 1, %s1434_s18  }
  0x3c   : > { %s1047_s7 = sshll.u32 (!%p1543_p3), %s1649_s29, 4  ;;  %s422_s9 = scalar_lea.sflag (!%p1543_p3), [#allocation4], %s1649_s29 }
  0x3d   : > { %s1655_s22 = scalar_lea.vmem (!%p1543_p3), [#allocation3], %s1047_s7 }
  0x40   : > { %1409 = dma.done.wait (%p1611_p12), %s422_s9, 256  }
  0x41   : > { %1411 = vsyncadd (%p1611_p12), %s422_s9, 4294967040 }
  0x42   : > { %1413 = dma.done.wait (%p51_p1), [#allocation7], 8192  }
  0x43   : > { %1415 = vsyncadd (%p51_p1), [#allocation7], 4294959104 }
  0x44   : > { %1417 = dma.done.wait (%p51_p1), [#allocation10], 6144  }
  0x45   : > { %1419 = vsyncadd (%p51_p1), [#allocation10], 4294961152 }
  0x46   : > { %1421 = dma.done.wait (%p51_p1), [#allocation13], 4096  }
  0x47   : > { %1423 = vsyncadd (%p51_p1), [#allocation13], 4294963200  ;;  %v1451_v0 = vmov 0.0   ;;  %v512_v1 = vld [vmem:[#allocation6 + $0x78] sm:$0xff]  ;;  %v511_v2 = vld [vmem:[#allocation6 + $0x70] sm:$0xff]  ;;  %s1060_s30 = sshll.u32 %s1538_s24, 4 }
  0x48   : > { %492 = vst [vmem:[#allocation2] sm:$0xff] %v1451_v0  ;;  %v528_v3 = vld [vmem:[#allocation6 + $0xf8] sm:$0xff]  ;;  %533 = vmatpush.msra.mxu0 %v512_v1  ;;  %v527_v4 = vld [vmem:[#allocation6 + $0xf0] sm:$0xff]  ;;  %v510_v5 = vld [vmem:[#allocation6 + $0x68] sm:$0xff]  ;;  %s910_s3 = scalar_lea.hbm %s1756_s11, %s1060_s30  ;;  %s489_s5 = scalar_lea.vmem [#allocation14], %s1047_s7 }
  0x49   : > { %556 = vmatpush.msra.mxu1 %v528_v3  ;;  %v526_v6 = vld [vmem:[#allocation6 + $0xe8] sm:$0xff]  ;;  %v509_v7 = vld [vmem:[#allocation6 + $0x60] sm:$0xff]  ;;  %v508_v9 = vld [vmem:[#allocation6 + $0x58] sm:$0xff]  ;;  %s911_s25 = sshll.u32 %s489_s5, 4  ;;  %s913_s26 = sshll.u32 %s910_s3, 4  ;;  %s912_s25 = int_to_ptr.vmem [resolvable:$true] %s911_s25  ;;  %s914_s26 = int_to_ptr.hbm [resolvable:$true] %s913_s26 }
  0x4a   : > { %534 = vmatpush.msra.mxu0 %v511_v2  ;;  %v525_v8 = vld [vmem:[#allocation6 + $0xe0] sm:$0xff]  ;;  %v524_v10 = vld [vmem:[#allocation6 + $0xd8] sm:$0xff]  ;;  %v507_v11 = vld [vmem:[#allocation6 + $0x50] sm:$0xff]  ;;  %s899_s24 = scalar_lea.sflag [#allocation5], %s1649_s29  ;;  %s1378_s12 = sshra.s32 %s914_s26, 4  ;;  %s1379_s12 = int_to_ptr.hbm [resolvable:$true] %s1378_s12 }
  0x4b   : > { %557 = vmatpush.msra.mxu1 %v527_v4  ;;  %v523_v12 = vld [vmem:[#allocation6 + $0xd0] sm:$0xff]  ;;  %v506_v13 = vld [vmem:[#allocation6 + $0x48] sm:$0xff]  ;;  %v616_v17 = vld [vmem:[#allocation8 + $0xf8] sm:$0xff]  ;;  %s1380_s14 = scalar_lea.hbm %s1379_s12, 16  ;;  %s1384_s15 = scalar_lea.hbm %s1756_s11, 32 }
  0x4c   : > { %535 = vmatpush.msra.mxu0 %v510_v5  ;;  %v522_v14 = vld [vmem:[#allocation6 + $0xc8] sm:$0xff]  ;;  %v1674_v15 = vld [vmem:[%s1655_s22] sm:$0xff]  ;;  %644 = vmatpush.msra.mxu3 %v616_v17  ;;  %v600_v21 = vld [vmem:[#allocation8 + $0x78] sm:$0xff]  ;;  %p1381_p1 = scmp.ne.s32.totalorder %s1379_s12, %s1380_s14  ;;  %p1385_p12 = scmp.lt.s32.totalorder %s1379_s12, %s1756_s11 }
  0x4d   : > { %558 = vmatpush.msra.mxu1 %v526_v6  ;;  %493 = vst [vmem:[#allocation2 + $0x8] sm:$0xff] %v1674_v15  ;;  %v1678_v16 = vld [vmem:[%s1655_s22 + $0x8] sm:$0xff]  ;;  %v615_v18 = vld [vmem:[#allocation8 + $0xf0] sm:$0xff]  ;;  %v505_v19 = vld [vmem:[#allocation6 + $0x40] sm:$0xff]  ;;  %621 = vmatpush.msra.mxu2 %v600_v21  ;;  %p1386_p8 = scmp.lt.s32.totalorder %s1384_s15, %s1380_s14 }
  0x4e   : > { %536 = vmatpush.msra.mxu0 %v509_v7  ;;  %v521_v20 = vld [vmem:[#allocation6 + $0xc0] sm:$0xff]  ;;  %494 = vst [vmem:[#allocation2 + $0x10] sm:$0xff] %v1678_v16  ;;  %v614_v22 = vld [vmem:[#allocation8 + $0xe8] sm:$0xff]  ;;  %v599_v23 = vld [vmem:[#allocation8 + $0x70] sm:$0xff]  ;;  %645 = vmatpush.msra.mxu3 %v615_v18  ;;  %p1382_p3 = pnand %p1381_p1, %p1615_p13 }
  0x4f   : > { %559 = vmatpush.msra.mxu1 %v525_v8  ;;  %v504_v24 = vld [vmem:[#allocation6 + $0x38] sm:$0xff]  ;;  %v613_v26 = vld [vmem:[#allocation8 + $0xe0] sm:$0xff]  ;;  %v598_v27 = vld [vmem:[#allocation8 + $0x68] sm:$0xff]  ;;  %622 = vmatpush.msra.mxu2 %v599_v23  ;;  %p1387_p7 = por %p1386_p8, %p1385_p12 }
  0x50   : > { %537 = vmatpush.msra.mxu0 %v508_v9  ;;  %v520_v25 = vld [vmem:[#allocation6 + $0xb8] sm:$0xff]  ;;  %v503_v28 = vld [vmem:[#allocation6 + $0x30] sm:$0xff]  ;;  %646 = vmatpush.msra.mxu3 %v614_v22  ;;  %v502_v30 = vld [vmem:[#allocation6 + $0x28] sm:$0xff]  ;;  %p1383_p5 = pneg %p1382_p3 }
  0x51   : > { %560 = vmatpush.msra.mxu1 %v524_v10  ;;  %v519_v29 = vld [vmem:[#allocation6 + $0xb0] sm:$0xff]  ;;  %v612_v31 = vld [vmem:[#allocation8 + $0xd8] sm:$0xff]  ;;  %v597_v32 = vld [vmem:[#allocation8 + $0x60] sm:$0xff]  ;;  %623 = vmatpush.msra.mxu2 %v598_v27 }
  0x52   : > { %538 = vmatpush.msra.mxu0 %v507_v11  ;;  %v501_v33 = vld [vmem:[#allocation6 + $0x20] sm:$0xff]  ;;  %v518_v34 = vld [vmem:[#allocation6 + $0xa8] sm:$0xff]  ;;  %647 = vmatpush.msra.mxu3 %v613_v26  ;;  %v611_v36 = vld [vmem:[#allocation8 + $0xd0] sm:$0xff]  ;;  %p1388_p9 = pnand %p1387_p7, %p1383_p5 }
  0x53   : > { %561 = vmatpush.msra.mxu1 %v523_v12  ;;  %v517_v35 = vld [vmem:[#allocation6 + $0xa0] sm:$0xff]  ;;  %v596_v37 = vld [vmem:[#allocation8 + $0x58] sm:$0xff]  ;;  %v610_v38 = vld [vmem:[#allocation8 + $0xc8] sm:$0xff]  ;;  %624 = vmatpush.msra.mxu2 %v597_v32 }
  0x54   : > { %539 = vmatpush.msra.mxu0 %v506_v13  ;;  %648 = vmatpush.msra.mxu3 %v612_v31  ;;  %v595_v39 = vld [vmem:[#allocation8 + $0x50] sm:$0xff]  ;;  %v500_v40 = vld [vmem:[#allocation6 + $0x18] sm:$0xff]  ;;  %v609_v42 = vld [vmem:[#allocation8 + $0xc0] sm:$0xff] }
  0x55   : > { %562 = vmatpush.msra.mxu1 %v522_v14  ;;  %v516_v41 = vld [vmem:[#allocation6 + $0x98] sm:$0xff]  ;;  %625 = vmatpush.msra.mxu2 %v596_v37  ;;  %v594_v43 = vld [vmem:[#allocation8 + $0x48] sm:$0xff]  ;;  %v499_v44 = vld [vmem:[#allocation6 + $0x10] sm:$0xff] }
  0x56   : > { %540 = vmatpush.msra.mxu0 %v505_v19  ;;  %649 = vmatpush.msra.mxu3 %v611_v36  ;;  %v515_v45 = vld [vmem:[#allocation6 + $0x90] sm:$0xff]  ;;  %v608_v46 = vld [vmem:[#allocation8 + $0xb8] sm:$0xff]  ;;  %v593_v47 = vld [vmem:[#allocation8 + $0x40] sm:$0xff] }
  0x57   : > { %563 = vmatpush.msra.mxu1 %v521_v20  ;;  %626 = vmatpush.msra.mxu2 %v595_v39  ;;  %v498_v48 = vld [vmem:[#allocation6 + $0x8] sm:$0xff]  ;;  %v607_v50 = vld [vmem:[#allocation8 + $0xb0] sm:$0xff]  ;;  %v497_v51 = vld [vmem:[#allocation6] sm:$0xff] }
  0x58   : > { %541 = vmatpush.msra.mxu0 %v504_v24  ;;  %650 = vmatpush.msra.mxu3 %v610_v38  ;;  %v514_v49 = vld [vmem:[#allocation6 + $0x88] sm:$0xff]  ;;  %v513_v52 = vld [vmem:[#allocation6 + $0x80] sm:$0xff]  ;;  %v684_v54 = vld [vmem:[#allocation9 + $0x78] sm:$0xff] }
  0x59   : > { %564 = vmatpush.msra.mxu1 %v520_v25  ;;  %627 = vmatpush.msra.mxu2 %v594_v43  ;;  %v495_v53 = vld [vmem:[#allocation2 + $0x7] sm:$0xff]  ;;  %v605_v57 = vld [vmem:[#allocation8 + $0xa0] sm:$0xff]  ;;  %v496_v59 = vld [vmem:[#allocation2 + $0xf] sm:$0xff] }
  0x5a   : > { %542 = vmatpush.msra.mxu0 %v503_v28  ;;  %651 = vmatpush.msra.mxu3 %v609_v42  ;;  %v606_v55 = vld [vmem:[#allocation8 + $0xa8] sm:$0xff]  ;;  %v683_v56 = vld [vmem:[#allocation9 + $0x70] sm:$0xff]  ;;  %v592_v60 = vld [vmem:[#allocation8 + $0x38] sm:$0xff] }
  0x5b   : > { %565 = vmatpush.msra.mxu1 %v519_v29  ;;  %628 = vmatpush.msra.mxu2 %v593_v47  ;;  %v682_v58 = vld [vmem:[#allocation9 + $0x68] sm:$0xff]  ;;  %v604_v61 = vld [vmem:[#allocation8 + $0x98] sm:$0xff]  ;;  %v681_v62 = vld [vmem:[#allocation9 + $0x60] sm:$0xff] }
  0x5c   : > { %543 = vmatpush.msra.mxu0 %v502_v30  ;;  %652 = vmatpush.msra.mxu3 %v608_v46  ;;  %v591_v63 = vld [vmem:[#allocation8 + $0x30] sm:$0xff]  ;;  %v680_v1 = vld [vmem:[#allocation9 + $0x58] sm:$0xff]  ;;  %v590_v2 = vld [vmem:[#allocation8 + $0x28] sm:$0xff] }
  0x5d   : > { %566 = vmatpush.msra.mxu1 %v518_v34  ;;  %629 = vmatpush.msra.mxu2 %v592_v60  ;;  %v603_v0 = vld [vmem:[#allocation8 + $0x90] sm:$0xff]  ;;  %v602_v3 = vld [vmem:[#allocation8 + $0x88] sm:$0xff]  ;;  %v589_v5 = vld [vmem:[#allocation8 + $0x20] sm:$0xff] }
  0x5e   : > { %544 = vmatpush.msra.mxu0 %v501_v33  ;;  %653 = vmatpush.msra.mxu3 %v607_v50  ;;  %v679_v4 = vld [vmem:[#allocation9 + $0x50] sm:$0xff]  ;;  %v601_v6 = vld [vmem:[#allocation8 + $0x80] sm:$0xff]  ;;  %v678_v7 = vld [vmem:[#allocation9 + $0x48] sm:$0xff] }
  0x5f   : > { %567 = vmatpush.msra.mxu1 %v517_v35  ;;  %630 = vmatpush.msra.mxu2 %v591_v63  ;;  %v588_v8 = vld [vmem:[#allocation8 + $0x18] sm:$0xff]  ;;  %v677_v9 = vld [vmem:[#allocation9 + $0x40] sm:$0xff]  ;;  %v587_v10 = vld [vmem:[#allocation8 + $0x10] sm:$0xff] }
  0x60   : > { %545 = vmatpush.msra.mxu0 %v500_v40  ;;  %654 = vmatpush.msra.mxu3 %v606_v55  ;;  %v676_v11 = vld [vmem:[#allocation9 + $0x38] sm:$0xff]  ;;  %v586_v12 = vld [vmem:[#allocation8 + $0x8] sm:$0xff]  ;;  %v675_v13 = vld [vmem:[#allocation9 + $0x30] sm:$0xff] }
  0x61   : > { %568 = vmatpush.msra.mxu1 %v516_v41  ;;  %631 = vmatpush.msra.mxu2 %v590_v2  ;;  %v585_v14 = vld [vmem:[#allocation8] sm:$0xff]  ;;  %v674_v17 = vld [vmem:[#allocation9 + $0x28] sm:$0xff]  ;;  %v672_v19 = vld [vmem:[#allocation9 + $0x18] sm:$0xff] }
  0x62   : > { %546 = vmatpush.msra.mxu0 %v499_v44  ;;  %655 = vmatpush.msra.mxu3 %v605_v57  ;;  %v673_v18 = vld [vmem:[#allocation9 + $0x20] sm:$0xff]  ;;  %v671_v20 = vld [vmem:[#allocation9 + $0x10] sm:$0xff]  ;;  %v670_v21 = vld [vmem:[#allocation9 + $0x8] sm:$0xff] }
  0x63   : > { %569 = vmatpush.msra.mxu1 %v515_v45  ;;  %632 = vmatpush.msra.mxu2 %v589_v5  ;;  %v669_v22 = vld [vmem:[#allocation9] sm:$0xff]  ;;  %v751_v23 = vld [vmem:[#allocation11 + $0xf8] sm:$0xff]  ;;  %v750_v24 = vld [vmem:[#allocation11 + $0xf0] sm:$0xff] }
  0x64   : > { %547 = vmatpush.msra.mxu0 %v498_v48  ;;  %656 = vmatpush.msra.mxu3 %v604_v61  ;;  %v735_v25 = vld [vmem:[#allocation11 + $0x78] sm:$0xff]  ;;  %v749_v26 = vld [vmem:[#allocation11 + $0xe8] sm:$0xff]  ;;  %v734_v27 = vld [vmem:[#allocation11 + $0x70] sm:$0xff] }
  0x65   : > { %570 = vmatpush.msra.mxu1 %v514_v49  ;;  %633 = vmatpush.msra.mxu2 %v588_v8  ;;  %v748_v28 = vld [vmem:[#allocation11 + $0xe0] sm:$0xff]  ;;  %v1179_v29 = vld [vmem:[%s1747_s2] ss:$0 sm:$0xff]  ;;  %v747_v30 = vld [vmem:[#allocation11 + $0xd8] sm:$0xff] }
  0x66   : > { %548 = vmatpush.msra.mxu0 %v497_v51  ;;  %657 = vmatpush.msra.mxu3 %v603_v0  ;;  %v746_v31 = vld [vmem:[#allocation11 + $0xd0] sm:$0xff]  ;;  %v733_v43 = vld [vmem:[#allocation11 + $0x68] sm:$0xff]  ;;  %v744_v45 = vld [vmem:[#allocation11 + $0xc0] sm:$0xff] }
  0x67   : > { %571 = vmatpush.msra.mxu1 %v513_v52  ;;  %549 = vmatmul.f32.vlgmr.msra.gmra.mxu0 %v495_v53  ;;  %v745_v44 = vld [vmem:[#allocation11 + $0xc8] sm:$0xff]  ;;  %v731_v46 = vld [vmem:[#allocation11 + $0x58] sm:$0xff]  ;;  %v730_v48 = vld [vmem:[#allocation11 + $0x50] sm:$0xff] }
  0x68   : > { %572 = vmatmul.f32.vlgmr.msra.gmra.mxu1 %v1674_v15  ;;  %689 = vmatpush.msrb.mxu0 %v684_v54  ;;  %v743_v47 = vld [vmem:[#allocation11 + $0xb8] sm:$0xff]  ;;  %v742_v49 = vld [vmem:[#allocation11 + $0xb0] sm:$0xff]  ;;  %v729_v50 = vld [vmem:[#allocation11 + $0x48] sm:$0xff] }
  0x69   : > { %658 = vmatpush.msra.mxu3 %v602_v3  ;;  %634 = vmatpush.msra.mxu2 %v587_v10  ;;  %v741_v51 = vld [vmem:[#allocation11 + $0xa8] sm:$0xff]  ;;  %v728_v52 = vld [vmem:[#allocation11 + $0x40] sm:$0xff]  ;;  %v727_v54 = vld [vmem:[#allocation11 + $0x38] sm:$0xff] }
  0x6a   : > { %690 = vmatpush.msrb.mxu0 %v683_v56  ;;  %756 = vmatpush.msrb.mxu1 %v735_v25  ;;  %v740_v53 = vld [vmem:[#allocation11 + $0xa0] sm:$0xff]  ;;  %v739_v55 = vld [vmem:[#allocation11 + $0x98] sm:$0xff]  ;;  %v726_v56 = vld [vmem:[#allocation11 + $0x30] sm:$0xff] }
  0x6b   : > { %659 = vmatpush.msra.mxu3 %v601_v6  ;;  %635 = vmatpush.msra.mxu2 %v586_v12  ;;  %v738_v57 = vld [vmem:[#allocation11 + $0x90] sm:$0xff]  ;;  %v724_v60 = vld [vmem:[#allocation11 + $0x20] sm:$0xff]  ;;  %v721_v0 = vld [vmem:[#allocation11 + $0x8] sm:$0xff] }
  0x6c   : > { %691 = vmatpush.msrb.mxu0 %v682_v58  ;;  %757 = vmatpush.msrb.mxu1 %v734_v27  ;;  %v725_v58 = vld [vmem:[#allocation11 + $0x28] sm:$0xff]  ;;  %v736_v61 = vld [vmem:[#allocation11 + $0x80] sm:$0xff]  ;;  %v722_v63 = vld [vmem:[#allocation11 + $0x10] sm:$0xff] }
  0x6d   : > { %636 = vmatpush.msra.mxu2 %v585_v14  ;;  %v839_v2 = vld [vmem:[#allocation12 + $0xf8] sm:$0xff]  ;;  %v838_v3 = vld [vmem:[#allocation12 + $0xf0] sm:$0xff]  ;;  %v1180_v5 = vld [vmem:[%s1749_s4] ss:$0 sm:$0xff] }
  0x6e   : > { %692 = vmatpush.msrb.mxu0 %v681_v62  ;;  %758 = vmatpush.msrb.mxu1 %v733_v43  ;;  %v723_v62 = vld [vmem:[#allocation11 + $0x18] sm:$0xff]  ;;  %v837_v6 = vld [vmem:[#allocation12 + $0xe8] sm:$0xff]  ;;  %v820_v14 = vld [vmem:[#allocation12 + $0x60] sm:$0xff] }
  0x6f   : > { %552 = vmatmul.f32.gmra.mxu0 %v496_v59  ;;  %779 = vmatpush.msrb.mxu2 %v751_v23  ;;  %v737_v59 = vld [vmem:[#allocation11 + $0x88] sm:$0xff]  ;;  %v818_v23 = vld [vmem:[#allocation12 + $0x50] sm:$0xff]  ;;  %v816_v43 = vld [vmem:[#allocation12 + $0x40] sm:$0xff] }
  0x70   : > { %575 = vmatmul.f32.gmra.mxu1 %v1678_v16  ;;  %693 = vmatpush.msrb.mxu0 %v680_v1  ;;  %v720_v1 = vld [vmem:[#allocation11] sm:$0xff]  ;;  %v1181_v10 = vld [vmem:[%s1751_s6] ss:$0 sm:$0xff] }
  0x71   : > { %780 = vmatpush.msrb.mxu2 %v750_v24  ;;  %v833_v25 = vld [vmem:[#allocation12 + $0xc8] sm:$0xff] }
  0x72   : > { %694 = vmatpush.msrb.mxu0 %v679_v4  ;;  %v823_v4 = vld [vmem:[#allocation12 + $0x78] sm:$0xff] }
  0x73   : > { %781 = vmatpush.msrb.mxu2 %v749_v26  ;;  %844 = vmatpush.msrb.mxu3 %v823_v4  ;;  %v817_v26 = vld [vmem:[#allocation12 + $0x48] sm:$0xff] }
  0x74   : > { %695 = vmatpush.msrb.mxu0 %v678_v7  ;;  %v822_v7 = vld [vmem:[#allocation12 + $0x70] sm:$0xff] }
  0x75   : > { %782 = vmatpush.msrb.mxu2 %v748_v28  ;;  %845 = vmatpush.msrb.mxu3 %v822_v7  ;;  %v832_v28 = vld [vmem:[#allocation12 + $0xc0] sm:$0xff] }
  0x76   : > { %696 = vmatpush.msrb.mxu0 %v677_v9  ;;  %v821_v9 = vld [vmem:[#allocation12 + $0x68] sm:$0xff] }
  0x77   : > { %783 = vmatpush.msrb.mxu2 %v747_v30  ;;  %846 = vmatpush.msrb.mxu3 %v821_v9 }
  0x78   : > { %697 = vmatpush.msrb.mxu0 %v676_v11  ;;  %v836_v11 = vld [vmem:[#allocation12 + $0xe0] sm:$0xff] }
  0x79   : > { %784 = vmatpush.msrb.mxu2 %v746_v31  ;;  %847 = vmatpush.msrb.mxu3 %v820_v14 }
  0x7a   : > { %698 = vmatpush.msrb.mxu0 %v675_v13 }
  0x7b   : > { %785 = vmatpush.msrb.mxu2 %v745_v44  ;;  %v828_v44 = vld [vmem:[#allocation12 + $0xa0] sm:$0xff] }
  0x7c   : > { %699 = vmatpush.msrb.mxu0 %v674_v17 }
  0x7d   : > { %786 = vmatpush.msrb.mxu2 %v744_v45  ;;  %v827_v45 = vld [vmem:[#allocation12 + $0x98] sm:$0xff] }
  0x7e   : > { %700 = vmatpush.msrb.mxu0 %v673_v18  ;;  %v835_v18 = vld [vmem:[#allocation12 + $0xd8] sm:$0xff] }
  0x7f   : > { %787 = vmatpush.msrb.mxu2 %v743_v47  ;;  %v826_v47 = vld [vmem:[#allocation12 + $0x90] sm:$0xff] }
  0x80   : > { %701 = vmatpush.msrb.mxu0 %v672_v19  ;;  %v819_v19 = vld [vmem:[#allocation12 + $0x58] sm:$0xff] }
  0x81   : > { %788 = vmatpush.msrb.mxu2 %v742_v49  ;;  %848 = vmatpush.msrb.mxu3 %v819_v19  ;;  %v825_v49 = vld [vmem:[#allocation12 + $0x88] sm:$0xff] }
  0x82   : > { %702 = vmatpush.msrb.mxu0 %v671_v20 }
  0x83   : > { %789 = vmatpush.msrb.mxu2 %v741_v51  ;;  %849 = vmatpush.msrb.mxu3 %v818_v23  ;;  %v824_v51 = vld [vmem:[#allocation12 + $0x80] sm:$0xff] }
  0x84   : > { %703 = vmatpush.msrb.mxu0 %v670_v21 }
  0x85   : > { %790 = vmatpush.msrb.mxu2 %v740_v53  ;;  %850 = vmatpush.msrb.mxu3 %v817_v26  ;;  %v810_v53 = vld [vmem:[#allocation12 + $0x10] sm:$0xff] }
  0x86   : > { %704 = vmatpush.msrb.mxu0 %v669_v22  ;;  %v834_v22 = vld [vmem:[#allocation12 + $0xd0] sm:$0xff] }
  0x87   : > { %705 = vmatmul.f32.vlgmr.msrb.gmra.mxu0 %v1674_v15  ;;  %791 = vmatpush.msrb.mxu2 %v739_v55  ;;  %v808_v55 = vld [vmem:[#allocation12] sm:$0xff] }
  0x88   : > { %867 = vmatpush.msra.mxu0 %v839_v2  ;;  %851 = vmatpush.msrb.mxu3 %v816_v43 }
  0x89   : > { %792 = vmatpush.msrb.mxu2 %v738_v57 }
  0x8a   : > { %868 = vmatpush.msra.mxu0 %v838_v3 }
  0x8b   : > { %793 = vmatpush.msrb.mxu2 %v737_v59 }
  0x8c   : > { %869 = vmatpush.msra.mxu0 %v837_v6 }
  0x8d   : > { %794 = vmatpush.msrb.mxu2 %v736_v61 }
  0x8e   : > { %870 = vmatpush.msra.mxu0 %v836_v11 }
  0x8f   : > { %708 = vmatmul.f32.gmra.mxu0 %v1678_v16  ;;  %v732_v16 = vld [vmem:[#allocation11 + $0x60] sm:$0xff] }
  0x90   : > { %759 = vmatpush.msrb.mxu1 %v732_v16  ;;  %871 = vmatpush.msra.mxu0 %v835_v18  ;;  %v815_v16 = vld [vmem:[#allocation12 + $0x38] sm:$0xff] }
  0x91   : > { %852 = vmatpush.msrb.mxu3 %v815_v16 }
  0x92   : > { %760 = vmatpush.msrb.mxu1 %v731_v46  ;;  %872 = vmatpush.msra.mxu0 %v834_v22  ;;  %v814_v46 = vld [vmem:[#allocation12 + $0x30] sm:$0xff] }
  0x93   : > { %853 = vmatpush.msrb.mxu3 %v814_v46 }
  0x94   : > { %761 = vmatpush.msrb.mxu1 %v730_v48  ;;  %873 = vmatpush.msra.mxu0 %v833_v25  ;;  %v813_v48 = vld [vmem:[#allocation12 + $0x28] sm:$0xff] }
  0x95   : > { %854 = vmatpush.msrb.mxu3 %v813_v48 }
  0x96   : > { %762 = vmatpush.msrb.mxu1 %v729_v50  ;;  %874 = vmatpush.msra.mxu0 %v832_v28  ;;  %v812_v50 = vld [vmem:[#allocation12 + $0x20] sm:$0xff] }
  0x97   : > { %855 = vmatpush.msrb.mxu3 %v812_v50 }
  0x98   : > { %763 = vmatpush.msrb.mxu1 %v728_v52  ;;  %v811_v52 = vld [vmem:[#allocation12 + $0x18] sm:$0xff] }
  0x99   : > { %856 = vmatpush.msrb.mxu3 %v811_v52 }
  0x9a   : > { %764 = vmatpush.msrb.mxu1 %v727_v54  ;;  %v809_v54 = vld [vmem:[#allocation12 + $0x8] sm:$0xff] }
  0x9b   : > { %857 = vmatpush.msrb.mxu3 %v810_v53 }
  0x9c   : > { %765 = vmatpush.msrb.mxu1 %v726_v56  ;;  %v1182_v56 = vld [vmem:[%s1753_s8] ss:$0 sm:$0xff] }
  0x9d   : > { %858 = vmatpush.msrb.mxu3 %v809_v54 }
  0x9e   : > { %766 = vmatpush.msrb.mxu1 %v725_v58 }
  0x9f   : > { %859 = vmatpush.msrb.mxu3 %v808_v55 }
  0xa0   : > { %767 = vmatpush.msrb.mxu1 %v724_v60 }
  0xa2   : > { %768 = vmatpush.msrb.mxu1 %v723_v62 }
  0xa4   : > { %769 = vmatpush.msrb.mxu1 %v722_v63 }
  0xa6   : > { %770 = vmatpush.msrb.mxu1 %v721_v0 }
  0xa8   : > { %771 = vmatpush.msrb.mxu1 %v720_v1 }
  0xaa   : > { %1061 = vmatpush.msra.mxu1 %v839_v2 }
  0xac   : > { %1062 = vmatpush.msra.mxu1 %v838_v3 }
  0xae   : > { %1063 = vmatpush.msra.mxu1 %v837_v6 }
  0xb0   : > { %1064 = vmatpush.msra.mxu1 %v836_v11 }
  0xb2   : > { %1065 = vmatpush.msra.mxu1 %v835_v18 }
  0xb4   : > { %1066 = vmatpush.msra.mxu1 %v834_v22 }
  0xb6   : > { %1067 = vmatpush.msra.mxu1 %v833_v25 }
  0xb8   : > { %1068 = vmatpush.msra.mxu1 %v832_v28 }
  0xe4   : > { %v550_v32 = vpop.f32.mrf.mxu0 }
  0xe5   : > { %v573_v33 = vpop.f32.mrf.mxu1  ;;  %v551_v34 = vadd.f32 %v1179_v29, %v550_v32 }
  0xe7   : > { %v574_v35 = vadd.f32 %v573_v33, %v551_v34  ;;  %v831_v33 = vld [vmem:[#allocation12 + $0xb8] sm:$0xff] }
  0xe8   : > { %875 = vmatpush.msra.mxu0 %v831_v33  ;;  %1069 = vmatpush.msra.mxu1 %v831_v33 }
  0xe9   : > { %v579_v15 = vmax.f32 %v574_v35, 0.0 }
  0xeb   : > { %581 = vst [vmem:[#allocation2 + $0x8] sm:$0xff] %v579_v15  ;;  %660 = vmatmul.f32.vlgmr.msra.gmra.mxu3 %v579_v15 }
  0xec   : > { %v553_v36 = vpop.f32.mrf.mxu0 }
  0xed   : > { %v576_v37 = vpop.f32.mrf.mxu1  ;;  %v554_v38 = vadd.f32 %v1179_v29, %v553_v36  ;;  %v830_v36 = vld [vmem:[#allocation12 + $0xb0] sm:$0xff] }
  0xee   : > { %876 = vmatpush.msra.mxu0 %v830_v36  ;;  %1070 = vmatpush.msra.mxu1 %v830_v36 }
  0xef   : > { %v577_v39 = vadd.f32 %v576_v37, %v554_v38  ;;  %v829_v38 = vld [vmem:[#allocation12 + $0xa8] sm:$0xff] }
  0xf0   : > { %877 = vmatpush.msra.mxu0 %v829_v38  ;;  %1071 = vmatpush.msra.mxu1 %v829_v38 }
  0xf1   : > { %v580_v40 = vmax.f32 %v577_v39, 0.0 }
  0xf2   : > { %v583_v41 = vld [vmem:[#allocation2 + $0x7] sm:$0xff]  ;;  %878 = vmatpush.msra.mxu0 %v828_v44  ;;  %1072 = vmatpush.msra.mxu1 %v828_v44 }
  0xf3   : > { %582 = vst [vmem:[#allocation2 + $0x10] sm:$0xff] %v580_v40  ;;  %637 = vmatmul.f32.vlgmr.msra.gmra.mxu2 %v583_v41  ;;  %663 = vmatmul.f32.gmra.mxu3 %v580_v40 }
  0xf4   : > { %879 = vmatpush.msra.mxu0 %v827_v45  ;;  %1073 = vmatpush.msra.mxu1 %v827_v45 }
  0xf6   : > { %880 = vmatpush.msra.mxu0 %v826_v47  ;;  %1074 = vmatpush.msra.mxu1 %v826_v47 }
  0xf8   : > { %881 = vmatpush.msra.mxu0 %v825_v49  ;;  %1075 = vmatpush.msra.mxu1 %v825_v49 }
  0xfa   : > { %v584_v42 = vld [vmem:[#allocation2 + $0xf] sm:$0xff]  ;;  %882 = vmatpush.msra.mxu0 %v824_v51  ;;  %1076 = vmatpush.msra.mxu1 %v824_v51 }
  0xfb   : > { %640 = vmatmul.f32.gmra.mxu2 %v584_v42 }
 0x104   : > { %v706_v8 = vpop.f32.mrf.mxu0 }
 0x105   : > { %v707_v21 = vadd.f32 %v1181_v10, %v706_v8 }
 0x10c   : > { %v709_v30 = vpop.f32.mrf.mxu0 }
 0x10d   : > { %v710_v15 = vadd.f32 %v1181_v10, %v709_v30 }
 0x16e   : > { %v661_v12 = vpop.f32.mrf.mxu3 }
 0x176   : > { %v638_v13 = vpop.f32.mrf.mxu2  ;;  %v664_v34 = vpop.f32.mrf.mxu3 }
 0x177   : > { %v639_v17 = vadd.f32 %v1180_v5, %v638_v13 }
 0x179   : > { %v662_v20 = vadd.f32 %v661_v12, %v639_v17 }
 0x17b   : > { %v667_v24 = vmax.f32 %v662_v20, 0.0 }
 0x17d   : > { %v712_v27 = vadd.f32 %v707_v21, %v667_v24 }
 0x17e   : > { %v641_v29 = vpop.f32.mrf.mxu2 }
 0x17f   : > { %v1694_v31 = vmax.f32 %v712_v27, 0.0  ;;  %v642_v32 = vadd.f32 %v1180_v5, %v641_v29  ;;  %v1183_v5 = vld [vmem:[%s1755_s10] ss:$0 sm:$0xff] }
 0x181   : > { %716 = vst [vmem:[#allocation2 + $0x8] sm:$0xff] %v1694_v31  ;;  %v665_v35 = vadd.f32 %v664_v34, %v642_v32  ;;  %795 = vmatmul.f32.vlgmr.msrb.gmra.mxu2 %v1694_v31 }
 0x183   : > { %v668_v37 = vmax.f32 %v665_v35, 0.0 }
 0x185   : > { %v713_v39 = vadd.f32 %v710_v15, %v668_v37 }
 0x187   : > { %v1698_v40 = vmax.f32 %v713_v39, 0.0 }
 0x188   : > { %v718_v41 = vld [vmem:[#allocation2 + $0x6] sm:$0xff] }
 0x189   : > { %717 = vst [vmem:[#allocation2 + $0x10] sm:$0xff] %v1698_v40  ;;  %772 = vmatmul.f32.vlgmr.msrb.gmra.mxu1 %v718_v41  ;;  %798 = vmatmul.f32.gmra.mxu2 %v1698_v40 }
 0x190   : > { %v719_v42 = vld [vmem:[#allocation2 + $0xe] sm:$0xff] }
 0x191   : > { %775 = vmatmul.f32.gmra.mxu1 %v719_v42 }
 0x204   : > { %v796_v57 = vpop.f32.mrf.mxu2 }
 0x206   : > { %v773_v58 = vpop.f32.mrf.mxu1 }
 0x207   : > { %v774_v59 = vadd.f32 %v1182_v56, %v773_v58 }
 0x209   : > { %v797_v60 = vadd.f32 %v796_v57, %v774_v59 }
 0x20b   : > { %v802_v61 = vmax.f32 %v797_v60, 0.0 }
 0x20c   : > { %v799_v0 = vpop.f32.mrf.mxu2 }
 0x20d   : > { %804 = vst [vmem:[#allocation2 + $0x8] sm:$0xff] %v802_v61  ;;  %883 = vmatmul.f32.vlgmr.msra.gmra.mxu0 %v802_v61 }
 0x20e   : > { %v776_v62 = vpop.f32.mrf.mxu1 }
 0x20f   : > { %v777_v63 = vadd.f32 %v1182_v56, %v776_v62 }
 0x211   : > { %v800_v1 = vadd.f32 %v799_v0, %v777_v63 }
 0x213   : > { %v803_v2 = vmax.f32 %v800_v1, 0.0 }
 0x214   : > { %v806_v3 = vld [vmem:[#allocation2 + $0x6] sm:$0xff] }
 0x215   : > { %805 = vst [vmem:[#allocation2 + $0x10] sm:$0xff] %v803_v2  ;;  %860 = vmatmul.f32.vlgmr.msrb.gmra.mxu3 %v806_v3  ;;  %886 = vmatmul.f32.vlgmr.msra.gmra.mxu1 %v803_v2 }
 0x21c   : > { %v807_v4 = vld [vmem:[#allocation2 + $0xe] sm:$0xff] }
 0x21d   : > { %863 = vmatmul.f32.gmra.mxu3 %v807_v4 }
 0x28a   : > { %v884_v8 = vpop.f32.mrf.mxu0 }
 0x292   : > { %v887_v17 = vpop.f32.mrf.mxu1 }
 0x298   : > { %v861_v6 = vpop.f32.mrf.mxu3 }
 0x299   : > { %v862_v7 = vadd.f32 %v1183_v5, %v861_v6 }
 0x29b   : > { %v885_v9 = vadd.f32 %v884_v8, %v862_v7 }
 0x29d   : > { %v890_v10 = vmax.f32 %v885_v9, 0.0 }
 0x29f   : > { %v892_v11 = vadd.f32 %v890_v10, %v1694_v31 }
 0x2a0   : > { %v864_v12 = vpop.f32.mrf.mxu3 }
 0x2a1   : > { %v894_v13 = vmax.f32 %v892_v11, 0.0  ;;  %v865_v14 = vadd.f32 %v1183_v5, %v864_v12 }
 0x2a3   : > { %896 = vst [vmem:[%s489_s5] sm:$0xff] %v894_v13  ;;  %v888_v18 = vadd.f32 %v887_v17, %v865_v14 }
 0x2a5   : > { %v891_v19 = vmax.f32 %v888_v18, 0.0 }
 0x2a7   : > { %v893_v20 = vadd.f32 %v891_v19, %v1698_v40 }
 0x2a9   : > { %v895_v21 = vmax.f32 %v893_v20, 0.0 }
 0x2ab   : > { %897 = vst [vmem:[%s489_s5 + $0x8] sm:$0xff] %v895_v21 }
 0x2ac   : > { %1391 = shalt.err (!%p1388_p9)
}
 0x2ad   : > { %s1452_s29 = smov 128   ;;  %s1453_s30 = smov 8  }
 0x2ae   : > { %1099 = dma.vmem_to_hbm [thread:$0]  (%p1615_p13), %s912_s25, 256, %s914_s26, %s899_s24, %s1452_s29, %s1452_s29, %s1453_s30  }
 0x2af PF: > { %s928_s9 = sand.u32 1, %s1430_s17   ;;  %p1777_p10 = scmp.ge.s32.totalorder %s1442_s20, 2 }
 0x2b0   : > { %s929_s22 = scalar_lea.sflag [#allocation5], %s928_s9 }
 0x2b1   : > { %p1122_p11 = pnand %p1777_p10, %p1620_p4 }
 0x2b3   : > { %p1123_p0 = pneg %p1122_p11 }
 0x2b5   : > { %1425 = dma.done.wait (%p1123_p0), %s929_s22, 256  }
 0x2b6   : > { %1427 = vsyncadd (%p1123_p0), %s929_s22, 4294967040  ;;  %p27_p2 = scmp.ge.s32.totalorder %s1595_s16, 4   ;;  %s1778_s17 = smov %s1434_s18 }
 0x2b7   : > { %s1779_s18 = smov %s1438_s19  ;;  %s1780_s19 = smov %s1607_s13 }
 0x2b8   : > { %s1781_s20 = smov %s1595_s16  ;;  %29 = sbr.rel (!%p27_p2) target bundleno = 14 (0xe), region = 129 }
 0x2bd   :  { %935 = vsyncpa [#allocation4], 1 }
 0x2be   :  { %937 = vsyncpa [#allocation4 + $0x1], 1 }
 0x2bf   :  { %938 = vsyncpa [#allocation7], 1 }
 0x2c0   :  { %939 = vsyncpa [#allocation10], 1 }
 0x2c1   :  { %940 = vsyncpa [#allocation13], 1 }
 0x2c2   :  { %941 = vsyncpa [#allocation5], 1 }
 0x2c3   :  { %943 = vsyncpa [#allocation5 + $0x1], 1 }

</bundles_post_ra>
